<compile_context>
chip_gen: v7x
topology: tpu7x:2x2x1
jax: 0.10.0
libtpu: 0.0.40
codegen_flags: <defaults>
</compile_context>

<pallas_src>
import functools

import jax
import jax.numpy as jnp
from jax.experimental import pallas as pl
from jax.experimental.pallas import tpu as pltpu

# ----------------------------- static problem sizes ---------------------------
B = 8              # batch
N_SFH = 64         # star-formation-history components (SSP grid size)
N_LAM = 256        # full wavelength grid
N_CURVE = 3        # number of curve parameters per component
N_PARAMS = 8       # total number of galaxy parameters
IDX_B2T = 0
CURVE_DISK_INDS = (1, 2, 3)
CURVE_BULGE_INDS = (4, 5, 6)
IDX_ONE = 7        # unused param slot, overwritten with 1.0 to feed folded biases
LAM_DA_LO = 40     # 'slice_lam_da' : dust-attenuated wavelength slice
LAM_DA_HI = 216
LN10 = 2.302585092994046


# --------------------------------- Pallas kernel ------------------------------
def _dust_attenuation_kernel(params_ref, sfh_ref, l_ssp_ref, w_curve_ref, out_ref,
                             *, apply_dust):
    params = params_ref[...]                                    # [B, N_PARAMS]

    # One fused MXU pass for both components: [2B, N_SFH] @ [N_SFH, N_LAM].
    l_both = jnp.dot(sfh_ref[...], l_ssp_ref[...],
                     preferred_element_type=jnp.float32)        # [2B, N_LAM]
    l_disk = l_both[:B]                                         # sublane-aligned split
    l_bulge = l_both[B:]

    if apply_dust:
        # One fused curve matmul: params_aug [B, N_PARAMS] @ W' [N_PARAMS, 2*N_LAM].
        # W' carries disk rows 1..3 (cols 0:N_LAM), bulge rows 4..6 (cols N_LAM:),
        # biases on row IDX_ONE, everything pre-scaled by -0.4*ln10 and exactly
        # zero outside the dust slice -> trans == exp(0) == 1 there (no mask).
        a = jnp.dot(params, w_curve_ref[...],
                    preferred_element_type=jnp.float32)         # [B, 2*N_LAM]
        trans = jnp.exp(a)                                      # 10 ** (-0.4 * A)
        l_disk = trans[:, :N_LAM] * l_disk
        l_bulge = trans[:, N_LAM:] * l_bulge

    # helper.get_recover(params, 'b_to_t'): stored in [-1, 1], recovered to [0, 1].
    b2t = 0.5 * (params[:, IDX_B2T:IDX_B2T + 1] + 1.0)          # [B, 1]
    out_ref[...] = l_disk + (l_bulge - l_disk) * b2t


# ---------------------------------- wrapper ------------------------------------
def dust_attenuation(params, sfh_disk, sfh_bulge, l_ssp, w_curve, apply_dust=True):
    """params: [B, N_PARAMS]; sfh_*: [B, N_SFH]; l_ssp: [N_SFH, N_LAM];
       w_curve: [N_PARAMS, 2*N_LAM] fused/pre-scaled curve weights (see
       build_curve_weight). Returns l_main [B, N_LAM]."""
    # Remaining wrapper-side glue (index bookkeeping only):
    params_aug = params.at[:, IDX_ONE].set(1.0)                 # constant-1 bias feed
    sfh_stack = jnp.concatenate([sfh_disk, sfh_bulge], axis=0)  # [2B, N_SFH]

    kernel = functools.partial(_dust_attenuation_kernel, apply_dust=apply_dust)
    vmem = pl.BlockSpec(memory_space=pltpu.MemorySpace.VMEM)    # full array in VMEM
    return pl.pallas_call(
        kernel,
        out_shape=jax.ShapeDtypeStruct((B, N_LAM), jnp.float32),
        in_specs=[vmem, vmem, vmem, vmem],
        out_specs=vmem,
    )(params_aug, sfh_stack, l_ssp, w_curve)


# ------------------------- weight prep (done once, offline) ---------------------
def build_curve_weight(w_disk, b_disk, w_bulge, b_bulge):
    """Fold disk/bulge curve weights + biases and the -0.4*ln10 transmission scale
    into a single [N_PARAMS, 2*N_LAM] matrix consumed directly by params_aug.
    w_*: [N_CURVE, N_LAM], b_*: [1, N_LAM]; all zero outside the dust slice."""
    scale = -0.4 * LN10
    w = jnp.zeros((N_PARAMS, 2 * N_LAM), jnp.float32)
    w = w.at[list(CURVE_DISK_INDS), :N_LAM].set(scale * w_disk)
    w = w.at[list(CURVE_BULGE_INDS), N_LAM:].set(scale * w_bulge)
    w = w.at[IDX_ONE, :N_LAM].set(scale * b_disk[0])
    w = w.at[IDX_ONE, N_LAM:].set(scale * b_bulge[0])
    return w


# ------------------------------ pure-JAX reference ------------------------------
def dust_attenuation_ref(params, sfh_disk, sfh_bulge, l_ssp,
                         w_disk, b_disk, w_bulge, b_bulge, apply_dust=True):
    b2t = (0.5 * (params[:, IDX_B2T] + 1.0))[:, None]
    l_disk = sfh_disk @ l_ssp
    l_bulge = sfh_bulge @ l_ssp
    if apply_dust:
        def apply_trans(l, inds, w, b):
            pc = params[:, list(inds)]                                    # [B, 3]
            a = pc @ w[:, LAM_DA_LO:LAM_DA_HI] + b[:, LAM_DA_LO:LAM_DA_HI]
            trans_da = 10.0 ** (-0.4 * a)
            trans = jnp.ones_like(l).at[:, LAM_DA_LO:LAM_DA_HI].set(trans_da)
            return trans * l
        l_disk = apply_trans(l_disk, CURVE_DISK_INDS, w_disk, b_disk)
        l_bulge = apply_trans(l_bulge, CURVE_BULGE_INDS, w_bulge, b_bulge)
    return l_disk * (1.0 - b2t) + l_bulge * b2t


# ----------------------------------- main ---------------------------------------
if __name__ == "__main__":
    key = jax.random.PRNGKey(0)
    k_params, k_sfhd, k_sfhb, k_ssp, k_wd, k_bd, k_wb, k_bb = jax.random.split(key, 8)

    # galaxy parameters stored in [-1, 1] (starduster convention)
    params = jax.random.uniform(k_params, (B, N_PARAMS), jnp.float32, -1.0, 1.0)
    sfh_disk = jax.random.uniform(k_sfhd, (B, N_SFH), jnp.float32, 0.0, 1.0)
    sfh_bulge = jax.random.uniform(k_sfhb, (B, N_SFH), jnp.float32, 0.0, 1.0)
    l_ssp = jax.random.uniform(k_ssp, (N_SFH, N_LAM), jnp.float32, 0.0, 1.0)

    # deterministic "curve" module parameters: nonzero only on the dust slice
    n_da = LAM_DA_HI - LAM_DA_LO
    w_disk = jnp.zeros((N_CURVE, N_LAM), jnp.float32).at[:, LAM_DA_LO:LAM_DA_HI].set(
        jax.random.uniform(k_wd, (N_CURVE, n_da), jnp.float32, -0.5, 0.5))
    b_disk = jnp.zeros((1, N_LAM), jnp.float32).at[:, LAM_DA_LO:LAM_DA_HI].set(
        jax.random.uniform(k_bd, (1, n_da), jnp.float32, 0.0, 0.5))
    w_bulge = jnp.zeros((N_CURVE, N_LAM), jnp.float32).at[:, LAM_DA_LO:LAM_DA_HI].set(
        jax.random.uniform(k_wb, (N_CURVE, n_da), jnp.float32, -0.5, 0.5))
    b_bulge = jnp.zeros((1, N_LAM), jnp.float32).at[:, LAM_DA_LO:LAM_DA_HI].set(
        jax.random.uniform(k_bb, (1, n_da), jnp.float32, 0.0, 0.5))

    # fused, pre-scaled curve weight (weight-prep time, not per call)
    w_curve = build_curve_weight(w_disk, b_disk, w_bulge, b_bulge)

    out = dust_attenuation(params, sfh_disk, sfh_bulge, l_ssp, w_curve,
                           apply_dust=True)
    out = jax.block_until_ready(out)

    ref = dust_attenuation_ref(params, sfh_disk, sfh_bulge, l_ssp,
                               w_disk, b_disk, w_bulge, b_bulge, apply_dust=True)
    assert out.shape == (B, N_LAM) and out.dtype == jnp.float32
    assert jnp.allclose(out, ref, rtol=1e-4, atol=1e-4), "mismatch vs reference"

    # also exercise the apply_dust=False path
    out_nd = jax.block_until_ready(
        dust_attenuation(params, sfh_disk, sfh_bulge, l_ssp, w_curve,
                         apply_dust=False))
    ref_nd = dust_attenuation_ref(params, sfh_disk, sfh_bulge, l_ssp,
                                  w_disk, b_disk, w_bulge, b_bulge, apply_dust=False)
    assert jnp.allclose(out_nd, ref_nd, rtol=1e-4, atol=1e-4)

    print("KERNEL_OK")
</pallas_src>

<mosaic_0001>
module attributes {stable_mosaic.version = 11 : i64} {
  func.func @_dust_attenuation_kernel(%arg0: memref<8x8xf32, #tpu.memory_space<vmem>>, %arg1: memref<16x64xf32, #tpu.memory_space<vmem>>, %arg2: memref<64x256xf32, #tpu.memory_space<vmem>>, %arg3: memref<8x512xf32, #tpu.memory_space<vmem>>, %arg4: memref<8x256xf32, #tpu.memory_space<vmem>>) attributes {dimension_semantics = [], scalar_prefetch = 0 : i64, scratch_operands = 0 : i64, tpu.core_type = #tpu.core_type<tc>} {
    %c0 = arith.constant 0 : index
    %c0_0 = arith.constant 0 : index
    %0 = vector.load %arg0[%c0, %c0_0] : memref<8x8xf32, #tpu.memory_space<vmem>>, vector<8x8xf32>
    %c0_1 = arith.constant 0 : index
    %c0_2 = arith.constant 0 : index
    %1 = vector.load %arg1[%c0_1, %c0_2] : memref<16x64xf32, #tpu.memory_space<vmem>>, vector<16x64xf32>
    %c0_3 = arith.constant 0 : index
    %c0_4 = arith.constant 0 : index
    %2 = vector.load %arg2[%c0_3, %c0_4] : memref<64x256xf32, #tpu.memory_space<vmem>>, vector<64x256xf32>
    %cst = arith.constant dense<0.000000e+00> : vector<16x256xf32>
    %3 = tpu.matmul %1, %2, %cst {dimension_numbers = #tpu.dot_dimension_numbers<[1], [0], [0], [1], [0, 0, 1, 1], [], []>} : vector<16x64xf32>, vector<64x256xf32>, vector<16x256xf32> -> vector<16x256xf32>
    %4 = vector.extract_strided_slice %3 {offsets = [0, 0], sizes = [8, 256], strides = [1, 1]} : vector<16x256xf32> to vector<8x256xf32>
    %5 = vector.extract_strided_slice %3 {offsets = [8, 0], sizes = [8, 256], strides = [1, 1]} : vector<16x256xf32> to vector<8x256xf32>
    %c0_5 = arith.constant 0 : index
    %c0_6 = arith.constant 0 : index
    %6 = vector.load %arg3[%c0_5, %c0_6] : memref<8x512xf32, #tpu.memory_space<vmem>>, vector<8x512xf32>
    %cst_7 = arith.constant dense<0.000000e+00> : vector<8x512xf32>
    %7 = tpu.matmul %0, %6, %cst_7 {dimension_numbers = #tpu.dot_dimension_numbers<[1], [0], [0], [1], [0, 0, 1, 1], [], []>} : vector<8x8xf32>, vector<8x512xf32>, vector<8x512xf32> -> vector<8x512xf32>
    %8 = math.exp %7 : vector<8x512xf32>
    %9 = vector.extract_strided_slice %8 {offsets = [0, 0], sizes = [8, 256], strides = [1, 1]} : vector<8x512xf32> to vector<8x256xf32>
    %10 = arith.mulf %9, %4 : vector<8x256xf32>
    %11 = vector.extract_strided_slice %8 {offsets = [0, 256], sizes = [8, 256], strides = [1, 1]} : vector<8x512xf32> to vector<8x256xf32>
    %12 = arith.mulf %11, %5 : vector<8x256xf32>
    %13 = vector.extract_strided_slice %0 {offsets = [0, 0], sizes = [8, 1], strides = [1, 1]} : vector<8x8xf32> to vector<8x1xf32>
    %cst_8 = arith.constant 1.000000e+00 : f32
    %14 = vector.broadcast %cst_8 : f32 to vector<8x1xf32>
    %15 = arith.addf %13, %14 : vector<8x1xf32>
    %cst_9 = arith.constant 5.000000e-01 : f32
    %16 = vector.broadcast %cst_9 : f32 to vector<8x1xf32>
    %17 = arith.mulf %16, %15 : vector<8x1xf32>
    %18 = arith.subf %12, %10 : vector<8x256xf32>
    %19 = vector.broadcast %17 : vector<8x1xf32> to vector<8x256xf32>
    %20 = arith.mulf %18, %19 : vector<8x256xf32>
    %21 = arith.addf %10, %20 : vector<8x256xf32>
    %c0_10 = arith.constant 0 : index
    %c0_11 = arith.constant 0 : index
    %22 = vector.load %arg4[%c0_10, %c0_11] : memref<8x256xf32, #tpu.memory_space<vmem>>, vector<8x256xf32>
    tpu.vector_store %arg4[%c0_10, %c0_11], %21 {strides = array<i32>} : memref<8x256xf32, #tpu.memory_space<vmem>>, vector<8x256xf32>,
    return
  }
}

</mosaic_0001>

<bundles_post_ra>
// kernel: tpu_custom_call.1
= control target key start
LH: loop header
LB: loop body
LE: loop exit
PB: predicated region body
PF: predicated region fallthrough
CT: control target
= control target key end

     0   :  { %9 = vsyncpa [#allocation3], 0  ;;  %s622_s0 = inlined_call_operand.hbm [shape: f32[8,8], index: 0, kind: input, shape index: {}]   ;;  %s623_s1 = inlined_call_operand.hbm [shape: f32[16,64], index: 1, kind: input, shape index: {}]   ;;  %s624_s2 = inlined_call_operand.hbm [shape: f32[64,256], index: 2, kind: input, shape index: {}]   ;;  %s625_s3 = inlined_call_operand.hbm [shape: f32[8,512], index: 3, kind: input, shape index: {}]   ;;  %s626_s4 = inlined_call_operand.hbm [shape: f32[8,256], index: 4, kind: output, shape index: {}]  }
   0x1   :  { %10 = vsyncpa [#allocation6], 0 }
   0x2   :  { %11 = vsyncpa [#allocation9], 0 }
   0x3   :  { %12 = vsyncpa [#allocation4], 0  ;;  %s524_s15 = smov [#allocation5]   ;;  %s406_s19 = scalar_lea.hbm %s623_s1, 256 }
   0x4   :  { %s28_s16 = sshll.u32 %s524_s15, 4  ;;  %p407_p0 = scmp.ne.s32.totalorder %s623_s1, %s406_s19  ;;  %s29_s16 = int_to_ptr.vmem [resolvable:$true] %s28_s16 }
   0x5   :  { %p410_p1 = scmp.lt.u32.totalorder %s406_s19, %s623_s1 }
   0x7   :  { %p412_p2 = pnand %p410_p1, %p407_p0 }
   0x9   :  { %415 = shalt.err (!%p412_p2)
}
   0xa   :  { %s416_s24 = scalar_lea.vmem %s29_s16, 256  ;;  %p421_p4 = scmp.lt.s32.totalorder %s29_s16, %s29_s16 }
   0xb   :  { %p417_p3 = scmp.ne.s32.totalorder %s29_s16, %s416_s24  ;;  %p422_p5 = scmp.lt.s32.totalorder %s416_s24, %s416_s24 }
   0xd   :  { %p423_p6 = por %p422_p5, %p421_p4 }
   0xf   :  { %p424_p7 = pnand %p423_p6, %p417_p3 }
  0x11   :  { %427 = shalt.err (!%p424_p7)
}
  0x12   :  { %s525_s25 = smov 128   ;;  %s526_s26 = smov 8  }
  0x13   :  { %34 = dma.hbm_to_vmem [thread:$0]  %s623_s1, 256, %s29_s16, [#allocation6], %s525_s25, %s525_s25, %s526_s26  }
  0x14   :  { %s527_s29 = smov [#allocation2]   ;;  %s528_s5 = smov [#allocation7]  }
  0x15   :  { %s19_s30 = sshll.u32 %s527_s29, 4  ;;  %s40_s6 = sshll.u32 %s528_s5, 4  ;;  %s20_s30 = int_to_ptr.vmem [resolvable:$true] %s19_s30  ;;  %s41_s6 = int_to_ptr.vmem [resolvable:$true] %s40_s6 }
  0x16   :  { %s428_s9 = scalar_lea.hbm %s622_s0, 128 }
  0x17   :  { %p429_p8 = scmp.ne.s32.totalorder %s622_s0, %s428_s9  ;;  %p432_p9 = scmp.lt.u32.totalorder %s428_s9, %s622_s0 }
  0x19   :  { %p434_p10 = pnand %p432_p9, %p429_p8 }
  0x1b   :  { %437 = shalt.err (!%p434_p10)
}
  0x1c   :  { %s438_s1 = scalar_lea.vmem %s20_s30, 128  ;;  %p443_p12 = scmp.lt.s32.totalorder %s20_s30, %s20_s30 }
  0x1d   :  { %p439_p11 = scmp.ne.s32.totalorder %s20_s30, %s438_s1  ;;  %p444_p13 = scmp.lt.s32.totalorder %s438_s1, %s438_s1 }
  0x1f   :  { %p445_p0 = por %p444_p13, %p443_p12 }
  0x21   :  { %p446_p1 = pnand %p445_p0, %p439_p11 }
  0x23   :  { %449 = shalt.err (!%p446_p1)
}
  0x24   :  { %22 = dma.hbm_to_vmem [thread:$0]  %s622_s0, 128, %s20_s30, [#allocation3]  }
  0x25   :  { %s450_s18 = scalar_lea.hbm %s624_s2, 2048 }
  0x26   :  { %p451_p2 = scmp.ne.s32.totalorder %s624_s2, %s450_s18  ;;  %p454_p3 = scmp.lt.u32.totalorder %s450_s18, %s624_s2 }
  0x28   :  { %p456_p4 = pnand %p454_p3, %p451_p2 }
  0x2a   :  { %459 = shalt.err (!%p456_p4)
}
  0x2b   :  { %s460_s23 = scalar_lea.vmem %s41_s6, 2048  ;;  %p465_p6 = scmp.lt.s32.totalorder %s41_s6, %s41_s6 }
  0x2c   :  { %p461_p5 = scmp.ne.s32.totalorder %s41_s6, %s460_s23  ;;  %p466_p7 = scmp.lt.s32.totalorder %s460_s23, %s460_s23 }
  0x2e   :  { %p467_p8 = por %p466_p7, %p465_p6 }
  0x30   :  { %p468_p9 = pnand %p467_p8, %p461_p5 }
  0x32   :  { %471 = shalt.err (!%p468_p9)
}
  0x33   :  { %s529_s0 = smov 256   ;;  %s530_s24 = smov 16  }
  0x34   :  { %46 = dma.hbm_to_vmem [thread:$0]  %s624_s2, 2048, %s41_s6, [#allocation6], %s529_s0, %s529_s0, %s530_s24  }
  0x35   :  { %s531_s27 = smov [#allocation8]   ;;  %s472_s5 = scalar_lea.hbm %s625_s3, 512 }
  0x36   :  { %s53_s28 = sshll.u32 %s531_s27, 4  ;;  %p473_p10 = scmp.ne.s32.totalorder %s625_s3, %s472_s5  ;;  %s54_s28 = int_to_ptr.vmem [resolvable:$true] %s53_s28 }
  0x37   :  { %p476_p11 = scmp.lt.u32.totalorder %s472_s5, %s625_s3 }
  0x39   :  { %p478_p12 = pnand %p476_p11, %p473_p10 }
  0x3b   :  { %481 = shalt.err (!%p478_p12)
}
  0x3c   :  { %s482_s11 = scalar_lea.vmem %s54_s28, 512  ;;  %p487_p0 = scmp.lt.s32.totalorder %s54_s28, %s54_s28 }
  0x3d   :  { %p483_p13 = scmp.ne.s32.totalorder %s54_s28, %s482_s11  ;;  %p488_p1 = scmp.lt.s32.totalorder %s482_s11, %s482_s11 }
  0x3f   :  { %p489_p2 = por %p488_p1, %p487_p0 }
  0x41   :  { %p490_p3 = pnand %p489_p2, %p483_p13 }
  0x43   :  { %493 = shalt.err (!%p490_p3)
}
  0x44   :  { %56 = dma.hbm_to_vmem [thread:$0]  %s625_s3, 512, %s54_s28, [#allocation9]  }
  0x45   :  { %516 = dma.done.wait [#allocation3], 128  }
  0x46   :  { %517 = vsyncadd [#allocation3], 4294967168 }
  0x47   :  { %518 = dma.done.wait [#allocation6], 2304  }
  0x48   :  { %519 = vsyncadd [#allocation6], 4294964992 }
  0x49   :  { %520 = dma.done.wait [#allocation9], 512  }
  0x4a   :  { %521 = vsyncadd [#allocation9], 4294966784  ;;  %v532_v0 = vmov 0.0   ;;  %v533_v1 = vmov 0   ;;  %v73_v2 = vld [vmem:[#allocation7 + $0x8] sm:$0xff]  ;;  %v75_v3 = vld [vmem:[#allocation7 + $0x18] sm:$0xff] }
  0x4b   :  { %244 = vmatprep.mubr.f32.mxu1 %v532_v0  ;;  %159 = vmatprep.mubr.f32.mxu0 %v532_v0  ;;  %v173_v4 = vld [vmem:[#allocation8 + $0x8] sm:$0xff]  ;;  %vm176_vm0 = vcmask 64512   ;;  %v370_v5 = vpack.c.bf16 %v75_v3, %v73_v2  ;;  %v72_v6 = vld [vmem:[#allocation7] sm:$0xff]  ;;  %v74_v7 = vld [vmem:[#allocation7 + $0x10] sm:$0xff]  ;;  %vm88_vm1 = vcmask 523264   ;;  %s534_s3 = smov [#allocation10]  }
  0x4c   :  { %397 = vset.pattern.permute.xlu0 %v533_v1  ;;  %180 = vmatprep.subr.mxu1 %v173_v4  ;;  %v172_v8 = vld [vmem:[#allocation8] sm:$0xff]  ;;  %v372_v9 = vpack.c.bf16 %v74_v7, %v72_v6  ;;  %v69_v10 = vld [vmem:[#allocation2] sm:$0xff]  ;;  %v175_v11 = vld [vmem:[#allocation8 + $0x18] sm:$0xff]  ;;  %s355_s12 = sshll.u32 %s534_s3, 4  ;;  %s356_s12 = int_to_ptr.vmem [resolvable:$true] %s355_s12 }
  0x4d   :  { %181 = vmatpush1.msra.mxu1 %v172_v8  ;;  %v174_v12 = vld [vmem:[#allocation8 + $0x10] sm:$0xff]  ;;  %371 = vmatprep.subr.bf16.mxu0 %v370_v5  ;;  %v77_v13 = vld [vmem:[#allocation7 + $0x28] sm:$0xff]  ;;  %v79_v14 = vld [vmem:[#allocation7 + $0x38] sm:$0xff]  ;;  %v334_v16 = vadd.f32 1.0, %v69_v10  ;;  %s494_s13 = scalar_lea.vmem %s356_s12, 256  ;;  %p499_p5 = scmp.lt.s32.totalorder %s356_s12, %s356_s12 }
  0x4e   :  { %368 = vmatmul.mubr.msk.f32.vlgmr.msra.gmra.mrb[0].mxu1 %vm176_vm0, %v69_v10  ;;  %v76_v15 = vld [vmem:[#allocation7 + $0x20] sm:$0xff]  ;;  %373 = vmatpush1.bf16.msra.mxu0 %v372_v9  ;;  %v374_v17 = vpack.c.bf16 %v79_v14, %v77_v13  ;;  %v78_v18 = vld [vmem:[#allocation7 + $0x30] sm:$0xff]  ;;  %v81_v19 = vld [vmem:[#allocation7 + $0x48] sm:$0xff]  ;;  %p495_p4 = scmp.ne.s32.totalorder %s356_s12, %s494_s13  ;;  %p500_p6 = scmp.lt.s32.totalorder %s494_s13, %s494_s13 }
  0x4f   :  { %251 = vmatprep.subr.mxu1 %v175_v11  ;;  %v83_v20 = vld [vmem:[#allocation7 + $0x58] sm:$0xff]  ;;  %v376_v21 = vpack.c.bf16 %v78_v18, %v76_v15  ;;  %315 = vmatprep.mubr.f32.mxu1 %v532_v0  ;;  %v80_v23 = vld [vmem:[#allocation7 + $0x40] sm:$0xff]  ;;  %v82_v24 = vld [vmem:[#allocation7 + $0x50] sm:$0xff]  ;;  %v335_v25 = vmul.f32 0.5, %v334_v16 }
  0x50   :  { %252 = vmatpush1.msra.mxu1 %v174_v12  ;;  %v378_v22 = vpack.c.bf16 %v83_v20, %v81_v19  ;;  %375 = vmatprep.subr.bf16.mxu0 %v374_v17  ;;  %v85_v26 = vld [vmem:[#allocation7 + $0x68] sm:$0xff]  ;;  %v87_v27 = vld [vmem:[#allocation7 + $0x78] sm:$0xff]  ;;  %v380_v28 = vpack.c.bf16 %v82_v24, %v80_v23  ;;  %v84_v30 = vld [vmem:[#allocation7 + $0x60] sm:$0xff]  ;;  %p501_p7 = por %p500_p6, %p499_p5 }
  0x51   :  { %340 = vperm.xlu0 %397, %v335_v25   ;;  %v382_v29 = vpack.c.bf16 %v87_v27, %v85_v26  ;;  %v86_v31 = vld [vmem:[#allocation7 + $0x70] sm:$0xff]  ;;  %v71_v34 = vld [vmem:[#allocation5 + $0x8] sm:$0xff] }
  0x52   :  { %369 = vmatmul.mubr.msk.f32.vlgmr.msra.gmra.mrb[2].mxu1 %vm176_vm0, %v69_v10  ;;  %377 = vmatpush1.bf16.msra.mxu0 %v376_v21  ;;  %v384_v32 = vpack.c.bf16 %v86_v31, %v84_v30  ;;  %v70_v33 = vld [vmem:[#allocation5] sm:$0xff]  ;;  %p502_p8 = pnand %p501_p7, %p495_p4 }
  0x53   :  { %379 = vmatprep.subr.bf16.mxu0 %v378_v22 }
  0x56   :  { %381 = vmatpush1.bf16.msra.mxu0 %v380_v28 }
  0x57   :  { %383 = vmatprep.subr.bf16.mxu0 %v382_v29 }
  0x5a   :  { %385 = vmatpush1.bf16.msra.mxu0 %v384_v32 }
  0x5d   :  { %366 = vmatmul.mubr.msk.f32.vlgmr.msra.gmra.mrb[0].mxu0 %vm88_vm1, %v70_v33 }
  0x5e   :  { %165 = vmatprep.mubr.f32.mxu0 %v532_v0 }
  0x61   :  { %367 = vmatmul.mubr.msk.f32.gmra.mrb[2].mxu0 %vm88_vm1, %v71_v34 }
  0xd0   :  { %v341_v55 = vpop.permute.xlu0 %340 }
 0x121   :  { %v246_v35 = vpop.f32.mrb[0].mxu1 }
 0x122   :  { %v322_v36 = vmul.f32 1.442695, %v246_v35  ;;  %v248_v37 = vpop.f32.mrb[1].mxu1 }
 0x123   :  { %v324_v38 = vmul.f32 1.442695, %v248_v37 }
 0x124   :  { %398 = vpow2.f32 %v322_v36 }
 0x125   :  { %v317_v39 = vpop.f32.mrb[2].mxu1  ;;  %400 = vpow2.f32 %v324_v38 }
 0x126   :  { %v326_v40 = vmul.f32 1.442695, %v317_v39  ;;  %v319_v41 = vpop.f32.mrb[3].mxu1 }
 0x127   :  { %v328_v42 = vmul.f32 1.442695, %v319_v41 }
 0x128   :  { %402 = vpow2.f32 %v326_v40 }
 0x129   :  { %404 = vpow2.f32 %v328_v42 }
 0x12e   :  { %v399_v43 = vpop.eup %398 }
 0x12f   :  { %v401_v44 = vpop.eup %400 }
 0x130   :  { %v161_v45 = vpop.f32.mrb[0].mxu0 }
 0x131   :  { %v330_v46 = vmul.f32 %v399_v43, %v161_v45  ;;  %v163_v47 = vpop.f32.mrb[1].mxu0 }
 0x132   :  { %v403_v48 = vpop.eup %402  ;;  %v331_v49 = vmul.f32 %v401_v44, %v163_v47 }
 0x133   :  { %v405_v50 = vpop.eup %404 }
 0x134   :  { %v167_v51 = vpop.f32.mrb[2].mxu0 }
 0x135   :  { %v332_v52 = vmul.f32 %v403_v48, %v167_v51  ;;  %v169_v53 = vpop.f32.mrb[3].mxu0 }
 0x136   :  { %v333_v54 = vmul.f32 %v405_v50, %v169_v53 }
 0x137   :  { %v336_v56 = vsub.f32 %v332_v52, %v330_v46 }
 0x138   :  { %v337_v57 = vsub.f32 %v333_v54, %v331_v49 }
 0x139   :  { %v343_v58 = vmul.f32 %v341_v55, %v336_v56 }
 0x13a   :  { %v344_v59 = vmul.f32 %v341_v55, %v337_v57 }
 0x13b   :  { %v345_v60 = vadd.f32 %v343_v58, %v330_v46 }
 0x13c   :  { %v346_v61 = vadd.f32 %v344_v59, %v331_v49 }
 0x13d   :  { %347 = vst [vmem:[#allocation10] sm:$0xff] %v345_v60 }
 0x13e   :  { %348 = vst [vmem:[#allocation10 + $0x8] sm:$0xff] %v346_v61 }
 0x13f   :  { %505 = shalt.err (!%p502_p8)
}
 0x140   :  { %s506_s15 = scalar_lea.hbm %s626_s4, 256 }
 0x141   :  { %p507_p9 = scmp.ne.s32.totalorder %s626_s4, %s506_s15  ;;  %p510_p10 = scmp.lt.u32.totalorder %s506_s15, %s626_s4 }
 0x143   :  { %p512_p11 = pnand %p510_p10, %p507_p9 }
 0x145   :  { %515 = shalt.err (!%p512_p11)
}
 0x146   :  { %358 = dma.vmem_to_hbm [thread:$0]  %s356_s12, 256, %s626_s4, [#allocation4]  }
 0x147   :  { %522 = dma.done.wait [#allocation4], 256  }
 0x148   :  { %523 = vsyncadd [#allocation4], 4294967040 }
 0x149   :  { %362 = vsyncpa [#allocation3], 1 }
 0x14a   :  { %363 = vsyncpa [#allocation6], 1 }
 0x14b   :  { %364 = vsyncpa [#allocation9], 1 }
 0x14c   :  { %365 = vsyncpa [#allocation4], 1 }

</bundles_post_ra>
